<compile_context>
chip_gen: v5e
topology: v5e:2x2
jax: 0.10.0
libtpu: 0.0.40
codegen_flags: <defaults>
</compile_context>

<pallas_src>
import functools

import jax
import jax.numpy as jnp
from jax import lax
from jax.experimental import pallas as pl
from jax.experimental.pallas import tpu as pltpu


def _contrastive_loss_kernel(x1_ref, x2_ref, lbl_ref, o_ref, *, margin, eps,
                             total_rows):
    # [TB, D] tiles; upcast to f32 for the distance reduction (VPU/XLU work,
    # not MXU, so f32 accumulation is the right call for accuracy).
    x1 = x1_ref[...].astype(jnp.float32)
    x2 = x2_ref[...].astype(jnp.float32)
    lbl = lbl_ref[...].astype(jnp.float32)                 # [TB, 1]

    diff = (x1 - x2) + eps                                 # pairwise_distance adds eps to the diff
    d2 = jnp.sum(diff * diff, axis=-1, keepdims=True)      # [TB, 1]
    d = jnp.sqrt(d2)                                       # per-row euclidean distance
    hinge = jnp.maximum(margin - d, 0.0)
    # mirror torch: (1-label)*d**2 + label*clamp(margin-d, 0)**2
    loss = (1.0 - lbl) * (d * d) + lbl * (hinge * hinge)   # [TB, 1]

    tb = loss.shape[0]
    # Lane-dense store: transpose the reduced column to a [1, TB] row (XLU).
    loss_t = jnp.transpose(loss, (1, 0))                   # [1, TB]
    # Zero the padded remainder rows so the wrapper's sum/B epilogue is exact
    # (the padded input rows are garbage; jnp.where *selects*, so any NaN/inf
    # they produce is discarded).
    row_ids = pl.program_id(0) * tb + lax.broadcasted_iota(jnp.int32, (1, tb), 1)
    loss_t = jnp.where(row_ids < total_rows, loss_t, 0.0)
    o_ref[...] = loss_t.astype(o_ref.dtype)


def _choose_block_rows(B, D, itemsize,
                       vmem_budget_bytes=24 * 1024 * 1024,
                       max_rows=4096):
    # Pipelined inputs: 2 arrays x 2 buffers x (tb, D) at the input dtype,
    # plus ~3 live (tb, D) f32 temporaries from the in-kernel upcast
    # (x1_f32 / x2_f32 / diff).  Counting the temporaries keeps the biggest
    # legal tile from spilling even on v5e's smaller scoped-VMEM default
    # (we also raise vmem_limit_bytes explicitly below).
    bytes_per_row = 2 * 2 * D * itemsize + 3 * D * 4
    tb = vmem_budget_bytes // max(bytes_per_row, 1)
    tb = max(8, min(int(tb), max_rows))
    tb = (tb // 8) * 8                                     # (8,128) sublane constraint
    if tb < B:
        return tb
    # Whole batch fits in a single tile.  Keep >= 2 grid steps when possible
    # so the "parallel" grid axis actually gives v7x's second TensorCore work.
    if B >= 16:
        half = -(-B // 2)
        return 8 * (-(-half // 8))                         # round half up to a multiple of 8 (< B for B >= 16)
    return B                                               # tiny batch: full-extent block


def contrastive_loss(output1, output2, label, margin=2.0, eps=1e-6,
                     block_rows=None):
    """output1, output2: [B, D]; label: scalar, [B] or [B, 1] -> scalar loss (f32)."""
    output1 = jnp.asarray(output1)
    output2 = jnp.asarray(output2)
    assert output1.ndim == 2 and output1.shape == output2.shape, \
        "expected output1/output2 of shape [B, D]"
    B, D = output1.shape

    lbl = jnp.asarray(label, dtype=jnp.float32)
    if lbl.ndim == 0:
        lbl = jnp.full((B,), lbl, dtype=jnp.float32)
    lbl = lbl.reshape(B, 1)

    itemsize = jnp.dtype(output1.dtype).itemsize
    if block_rows is None:
        tb = _choose_block_rows(B, D, itemsize)
    else:
        tb = min(int(block_rows), B)
        if tb < B:
            assert tb % 8 == 0, "block_rows must be a multiple of 8 when smaller than B"
    num_tiles = pl.cdiv(B, tb)
    grid = (num_tiles,)

    kernel = functools.partial(
        _contrastive_loss_kernel, margin=float(margin), eps=float(eps),
        total_rows=int(B))

    per_row = pl.pallas_call(
        kernel,
        # Lane-dense per-row loss slab: one [1, tb] row per grid step.
        out_shape=jax.ShapeDtypeStruct((num_tiles, tb), jnp.float32),
        grid=grid,
        in_specs=[
            pl.BlockSpec((tb, D), lambda i: (i, 0)),
            pl.BlockSpec((tb, D), lambda i: (i, 0)),
            pl.BlockSpec((tb, 1), lambda i: (i, 0)),
        ],
        out_specs=pl.BlockSpec((1, tb), lambda i: (i, 0)),
        compiler_params=pltpu.CompilerParams(
            dimension_semantics=("parallel",),
            # Raise the scoped-VMEM ceiling so the larger double-buffered
            # tiles (plus f32 temporaries) fit on all of v5e/v6e/v7x while
            # staying well under v7x's 64 MiB physical VMEM per TensorCore.
            vmem_limit_bytes=48 * 1024 * 1024,
        ),
        cost_estimate=pl.CostEstimate(
            flops=4 * B * D + 8 * B,
            transcendentals=B,
            bytes_accessed=int(2 * B * D * itemsize + B * 4
                               + num_tiles * tb * 4),
        ),
    )(output1, output2, lbl)

    # Trivial epilogue: padded rows were zeroed in-kernel, so sum / B is the
    # exact mean over the B real rows (keeps the grid fully parallel for the
    # v7x megacore instead of serializing on an in-kernel accumulator).
    return jnp.sum(per_row) / B


if __name__ == "__main__":
    key = jax.random.PRNGKey(0)
    k1, k2, k3, k4, k5, k6 = jax.random.split(key, 6)

    margin = 2.0
    eps = 1e-6

    def ref_loss(a, b, label, margin=2.0, eps=1e-6):
        d = jnp.sqrt(jnp.sum((a - b + eps) ** 2, axis=-1))            # [B]
        return jnp.mean((1.0 - label) * d ** 2
                        + label * jnp.maximum(margin - d, 0.0) ** 2)

    # Small shapes consistent with the module: batch=8, hidden=32 embeddings.
    B, D = 8, 32
    o1 = jax.random.normal(k1, (B, D), dtype=jnp.float32)
    o2 = jax.random.normal(k2, (B, D), dtype=jnp.float32)
    lbl = jax.random.bernoulli(k3, 0.5, (B,)).astype(jnp.float32)

    out = jax.block_until_ready(contrastive_loss(o1, o2, lbl, margin=margin, eps=eps))
    ref = ref_loss(o1, o2, lbl, margin, eps)
    assert out.shape == ()
    assert jnp.allclose(out, ref, atol=1e-5, rtol=1e-5), "mismatch vs reference"

    # Exercise the multi-tile + remainder (padded last block) path.
    B2, D2 = 20, 32
    o1b = jax.random.normal(k4, (B2, D2), dtype=jnp.float32)
    o2b = jax.random.normal(k5, (B2, D2), dtype=jnp.float32)
    lblb = jax.random.bernoulli(k6, 0.5, (B2,)).astype(jnp.float32)
    out2 = jax.block_until_ready(
        contrastive_loss(o1b, o2b, lblb, margin=margin, eps=eps, block_rows=8))
    ref2 = ref_loss(o1b, o2b, lblb, margin, eps)
    assert jnp.allclose(out2, ref2, atol=1e-5, rtol=1e-5), "mismatch vs reference (tiled)"

    # Exercise the auto tile-size path with >= 2 grid steps (B >= 16, fits budget).
    out3 = jax.block_until_ready(
        contrastive_loss(o1b, o2b, lblb, margin=margin, eps=eps))
    assert jnp.allclose(out3, ref2, atol=1e-5, rtol=1e-5), "mismatch vs reference (auto tb)"

    print("KERNEL_OK")
</pallas_src>

<mosaic_0001>
module attributes {stable_mosaic.version = 11 : i64} {
  func.func @_contrastive_loss_kernel(%arg0: i32, %arg1: memref<8x32xf32, #tpu.memory_space<vmem>>, %arg2: memref<8x32xf32, #tpu.memory_space<vmem>>, %arg3: memref<8x1xf32, #tpu.memory_space<vmem>>, %arg4: memref<1x8xf32, #tpu.memory_space<vmem>>) attributes {dimension_semantics = [#tpu.dimension_semantics<parallel>], iteration_bounds = array<i64: 1>, scalar_prefetch = 0 : i64, scratch_operands = 0 : i64, tpu.core_type = #tpu.core_type<tc>, window_params = [{transform_indices = @transform_0, window_bounds = array<i64: 8, 32>}, {transform_indices = @transform_1, window_bounds = array<i64: 8, 32>}, {transform_indices = @transform_2, window_bounds = array<i64: 8, 1>}, {transform_indices = @transform_3, window_bounds = array<i64: 1, 8>}]} {
    %c0 = arith.constant 0 : index
    %c0_0 = arith.constant 0 : index
    %0 = vector.load %arg1[%c0, %c0_0] : memref<8x32xf32, #tpu.memory_space<vmem>>, vector<8x32xf32>
    %c0_1 = arith.constant 0 : index
    %c0_2 = arith.constant 0 : index
    %1 = vector.load %arg2[%c0_1, %c0_2] : memref<8x32xf32, #tpu.memory_space<vmem>>, vector<8x32xf32>
    %c0_3 = arith.constant 0 : index
    %c0_4 = arith.constant 0 : index
    %2 = vector.load %arg3[%c0_3, %c0_4] : memref<8x1xf32, #tpu.memory_space<vmem>>, vector<8x1xf32>
    %3 = arith.subf %0, %1 : vector<8x32xf32>
    %cst = arith.constant 9.99999997E-7 : f32
    %4 = vector.broadcast %cst : f32 to vector<8x32xf32>
    %5 = arith.addf %3, %4 : vector<8x32xf32>
    %6 = arith.mulf %5, %5 : vector<8x32xf32>
    %cst_5 = arith.constant dense<0.000000e+00> : vector<8xf32>
    %7 = vector.multi_reduction <add>, %6, %cst_5 [1] : vector<8x32xf32> to vector<8xf32>
    %8 = vector.shape_cast %7 : vector<8xf32> to vector<8x1xf32>
    %9 = math.sqrt %8 : vector<8x1xf32>
    %cst_6 = arith.constant 2.000000e+00 : f32
    %10 = vector.broadcast %cst_6 : f32 to vector<8x1xf32>
    %11 = arith.subf %10, %9 : vector<8x1xf32>
    %cst_7 = arith.constant 0.000000e+00 : f32
    %12 = vector.broadcast %cst_7 : f32 to vector<8x1xf32>
    %13 = arith.maximumf %11, %12 : vector<8x1xf32>
    %cst_8 = arith.constant 1.000000e+00 : f32
    %14 = vector.broadcast %cst_8 : f32 to vector<8x1xf32>
    %15 = arith.subf %14, %2 : vector<8x1xf32>
    %16 = arith.mulf %9, %9 : vector<8x1xf32>
    %17 = arith.mulf %15, %16 : vector<8x1xf32>
    %18 = arith.mulf %13, %13 : vector<8x1xf32>
    %19 = arith.mulf %2, %18 : vector<8x1xf32>
    %20 = arith.addf %17, %19 : vector<8x1xf32>
    %21 = tpu.transpose %20, [1, 0] : vector<8x1xf32> -> vector<1x8xf32>
    %c8_i32 = arith.constant 8 : i32
    %22 = arith.muli %arg0, %c8_i32 : i32
    %23 = tpu.iota {dimensions = array<i32: 1>} : vector<1x8xi32>
    %24 = vector.broadcast %22 : i32 to vector<1x8xi32>
    %25 = arith.addi %24, %23 : vector<1x8xi32>
    %c8_i32_9 = arith.constant 8 : i32
    %26 = vector.broadcast %c8_i32_9 : i32 to vector<1x8xi32>
    %27 = arith.cmpi slt, %25, %26 : vector<1x8xi32>
    %cst_10 = arith.constant 0.000000e+00 : f32
    %28 = vector.broadcast %cst_10 : f32 to vector<1x8xf32>
    %29 = arith.select %27, %21, %28 : vector<1x8xi1>, vector<1x8xf32>
    %c0_11 = arith.constant 0 : index
    %c0_12 = arith.constant 0 : index
    %30 = vector.load %arg4[%c0_11, %c0_12] : memref<1x8xf32, #tpu.memory_space<vmem>>, vector<1x8xf32>
    tpu.vector_store %arg4[%c0_11, %c0_12], %29 {strides = array<i32>} : memref<1x8xf32, #tpu.memory_space<vmem>>, vector<1x8xf32>,
    return
  }
  func.func @transform_0(%arg0: i32) -> (i32, i32) {
    %c0_i32 = arith.constant 0 : i32
    %c0_i32_0 = arith.constant 0 : i32
    return %arg0, %c0_i32 : i32, i32
  }
  func.func @transform_1(%arg0: i32) -> (i32, i32) {
    %c0_i32 = arith.constant 0 : i32
    %c0_i32_0 = arith.constant 0 : i32
    return %arg0, %c0_i32 : i32, i32
  }
  func.func @transform_2(%arg0: i32) -> (i32, i32) {
    %c0_i32 = arith.constant 0 : i32
    %c0_i32_0 = arith.constant 0 : i32
    return %arg0, %c0_i32 : i32, i32
  }
  func.func @transform_3(%arg0: i32) -> (i32, i32) {
    %c0_i32 = arith.constant 0 : i32
    %c0_i32_0 = arith.constant 0 : i32
    return %arg0, %c0_i32 : i32, i32
  }
}

</mosaic_0001>

<bundles_post_ra>
// kernel: tpu_custom_call.1
= control target key start
LH: loop header
LB: loop body
LE: loop exit
PB: predicated region body
PF: predicated region fallthrough
CT: control target
= control target key end

     0   :  { %8 = vsyncpa [#allocation3], 0  ;;  %s208_s0 = inlined_call_operand.vmem [shape: f32[8,32], index: 0, kind: input, shape index: {}]   ;;  %s209_s1 = inlined_call_operand.hbm [shape: f32[8,32], index: 1, kind: input, shape index: {}]   ;;  %s210_s2 = inlined_call_operand.vmem [shape: f32[8,1], index: 2, kind: input, shape index: {}]   ;;  %s211_s3 = inlined_call_operand.hbm [shape: f32[1,8], index: 3, kind: output, shape index: {}]  }
   0x1   :  { %9 = vsyncpa [#allocation4], 0  ;;  %s17_s14 = sshll.u32 %s209_s1, 4  ;;  %s174_s15 = smov [#allocation2]   ;;  %s18_s14 = int_to_ptr.hbm [resolvable:$true] %s17_s14 }
   0x2   :  { %s19_s16 = sshll.u32 %s174_s15, 4  ;;  %s20_s16 = int_to_ptr.vmem [resolvable:$true] %s19_s16 }
   0x3   :  { %22 = dma.hbm_to_vmem [thread:$0]  %s18_s14, 128, %s20_s16, [#allocation3]  }
   0x4   :  { %170 = dma.done.wait [#allocation3], 128  }
   0x5   :  { %171 = vsyncadd [#allocation3], 4294967168  ;;  %v29_v0 = vld [vmem:[%s208_s0] sm:$0xff]  ;;  %vm35_vm0 = vcmask 261120   ;;  %v92_v26 = vlaneseq  ;;  %s175_s19 = smov [#allocation5]   ;;  %s107_s23 = sshll.u32 %s211_s3, 4  ;;  %s108_s23 = int_to_ptr.hbm [resolvable:$true] %s107_s23 }
   0x6   :  { %v30_v1 = vld [vmem:[#allocation2] sm:$0xff]  ;;  %s105_s20 = sshll.u32 %s175_s19, 4  ;;  %vm98_vm4 = vcmask 57344   ;;  %s106_s20 = int_to_ptr.vmem [resolvable:$true] %s105_s20 }
   0x7   :  { %v32_v2 = vsub.f32 %v29_v0, %v30_v1  ;;  %v31_v16 = vld [vmem:[%s210_s2] sm:$0xff]  ;;  %v93_v27 = vand.u32 127, %v92_v26 }
   0x8   :  { %v53_v20 = vsub.f32 1.0, %v31_v16 }
   0x9   :  { %v33_v3 = vadd.f32 1e-06, %v32_v2  ;;  %vm96_vm3 = vcmp.lt.s32.totalorder %v93_v27, 8 }
   0xb   :  { %v34_v4 = vmul.f32 %v33_v3, %v33_v3 }
   0xd   :  { %v36_v5 = vsel %vm35_vm0, %v34_v4, 0.0 }
   0xe   :  { %37 = vadd.xlane.f32.xlu0 %v36_v5 }
  0x81   :  { %v38_v6 = vpop.xlane.xlu0 %37 }
  0x82   :  { %120 = vrsqrt.f32 %v38_v6  ;;  %vm46_vm1 = vcmp.eq.f32.partialorder %v38_v6, inf  ;;  %v49_v14 = vand.u32 2147483648, %v38_v6  ;;  %vm48_vm2 = vcmp.eq.f32.partialorder %v38_v6, 0.0 }
  0x88   :  { %v121_v7 = vpop.eup %120 }
  0x89   :  { %v40_v8 = vmul.f32 %v121_v7, %v38_v6 }
  0x8b   :  { %v41_v9 = vmul.f32 %v121_v7, %v40_v8 }
  0x8d   :  { %v42_v10 = vmul.f32 0.5, %v41_v9 }
  0x8f   :  { %v43_v11 = vsub.f32 1.5, %v42_v10 }
  0x91   :  { %v44_v12 = vmul.f32 %v121_v7, %v43_v11 }
  0x93   :  { %v45_v13 = vmul.f32 %v44_v12, %v38_v6 }
  0x95   :  { %v47_v15 = vsel %vm46_vm1, %v38_v6, %v45_v13 }
  0x96   :  { %v50_v17 = vsel %vm48_vm2, %v49_v14, %v47_v15 }
  0x97   :  { %v51_v18 = vsub.f32 2.0, %v50_v17  ;;  %v54_v21 = vmul.f32 %v50_v17, %v50_v17 }
  0x99   :  { %v52_v19 = vmax.f32 %v51_v18, 0.0  ;;  %v55_v23 = vmul.f32 %v54_v21, %v53_v20 }
  0x9b   :  { %v56_v22 = vmul.f32 %v52_v19, %v52_v19 }
  0x9d   :  { %v57_v24 = vmul.f32 %v56_v22, %v31_v16 }
  0x9f   :  { %v58_v25 = vadd.f32 %v57_v24, %v55_v23 }
  0xa1   :  { %59 = vxpose.xlu0.b32.start.end [1/1] (short) (narrow) %v58_v25, 8 }
 0x145   :  { %v75_v28 = vpop.trf.xlu0 }
 0x146   :  { %v97_v29 = vsel %vm96_vm3, %v75_v28, 0.0 }
 0x147   :  { %99 = vst.msk [vmem:[#allocation5] sm:$0x1] %vm98_vm4, %v97_v29 }
 0x148   :  { %110 = dma.vmem_to_hbm [thread:$0]  %s106_s20, 16, %s108_s23, [#allocation4]  }
 0x149   :  { %172 = dma.done.wait [#allocation4], 16  }
 0x14a   :  { %173 = vsyncadd [#allocation4], 4294967280 }
 0x14b   :  { %115 = vsyncpa [#allocation3], 1 }
 0x14c   :  { %116 = vsyncpa [#allocation4], 1 }

</bundles_post_ra>
